<compile_context>
chip_gen: v7x
topology: tpu7x:2x2x1
jax: 0.10.0
libtpu: 0.0.40
codegen_flags: <defaults>
</compile_context>

<pallas_src>
import functools

import jax
import jax.numpy as jnp
from jax.experimental import pallas as pl
from jax.experimental.pallas import tpu as pltpu

EPS = 1e-5                       # torch.nn.LayerNorm default
VMEM_LIMIT = 48 * 1024 * 1024    # headroom below v7x's 64 MiB physical VMEM


def _ln(x, g, b):
    """LayerNorm over the last dim in f32. g/b are (1, D) and broadcast."""
    mu = jnp.mean(x, axis=-1, keepdims=True)
    xc = x - mu
    var = jnp.mean(xc * xc, axis=-1, keepdims=True)
    return xc * jax.lax.rsqrt(var + EPS) * g + b


def _gelu(u):
    # tanh approximation (EUP tanh); reference backbone may use erf / QuickGELU.
    return 0.5 * u * (1.0 + jnp.tanh(0.7978845608028654 * (u + 0.044715 * u * u * u)))


def _const_spec(shape):
    """BlockSpec for grid-invariant operands (weights): single-buffered."""
    return pl.BlockSpec(shape, lambda i: (0,) * len(shape),
                        pipeline_mode=pl.Buffered(1))


# ----------------------------------------------------------------------------- kernels
def patch_embed_kernel(x_ref, w_ref, o_ref):
    # conv1 (kernel=stride=P, bias=False) as a bf16 matmul with f32 accumulation.
    o_ref[...] = jnp.dot(x_ref[...], w_ref[...],
                         preferred_element_type=jnp.float32).astype(o_ref.dtype)


def layernorm_kernel(x_ref, g_ref, b_ref, o_ref):
    # ln_pre of the visual backbone (row-tiled).
    x = x_ref[...].astype(jnp.float32)
    o_ref[...] = _ln(x, g_ref[...], b_ref[...]).astype(o_ref.dtype)


def resblock_kernel(x_ref, g1_ref, b1_ref, wqkv_ref, bqkv_ref, wo_ref, bo_ref,
                    g2_ref, b2_ref, wfc_ref, bfc_ref, wpr_ref, bpr_ref, o_ref,
                    *, scale, d):
    """One pre-LN transformer block (single-head attention + GELU MLP), per batch elem."""
    x = x_ref[0].astype(jnp.float32)                                    # [L, D] residual
    # --- attention branch (fused QKV) ---
    h = _ln(x, g1_ref[...], b1_ref[...]).astype(jnp.bfloat16)
    qkv = jnp.dot(h, wqkv_ref[...], preferred_element_type=jnp.float32) + bqkv_ref[...]
    q = (qkv[:, :d] * scale).astype(jnp.bfloat16)        # fold 1/sqrt(D) into q ([L,D])
    k = qkv[:, d:2 * d].astype(jnp.bfloat16)
    v = qkv[:, 2 * d:].astype(jnp.bfloat16)
    s = jax.lax.dot_general(q, k, (((1,), (1,)), ((), ())),
                            preferred_element_type=jnp.float32)          # [L, L] f32
    s = s - jnp.max(s, axis=-1, keepdims=True)
    p = jnp.exp(s)
    l = jnp.sum(p, axis=-1, keepdims=True)
    a = jnp.dot(p.astype(jnp.bfloat16), v, preferred_element_type=jnp.float32)
    a = a * pl.reciprocal(l, approx=True)                # normalize on [L,1] via EUP
    x = x + jnp.dot(a.astype(jnp.bfloat16), wo_ref[...],
                    preferred_element_type=jnp.float32) + bo_ref[...]
    # --- MLP branch ---
    h2 = _ln(x, g2_ref[...], b2_ref[...]).astype(jnp.bfloat16)
    u = jnp.dot(h2, wfc_ref[...], preferred_element_type=jnp.float32) + bfc_ref[...]
    u = _gelu(u)
    x = x + jnp.dot(u.astype(jnp.bfloat16), wpr_ref[...],
                    preferred_element_type=jnp.float32) + bpr_ref[...]
    o_ref[0] = x.astype(o_ref.dtype)


def head_kernel(xp_ref, xu_ref, g1_ref, b1_ref, w_ref, bias_ref, g2_ref, b2_ref, o_ref):
    """Fused CapWrapper head: [pen ; ult] -> ln_pre_out -> linear_out -> ln_post_out."""
    def proc(xr):
        x = xr[0].astype(jnp.float32)                                    # [L, Din]
        h = _ln(x, g1_ref[...], b1_ref[...]).astype(jnp.bfloat16)
        y = jnp.dot(h, w_ref[...], preferred_element_type=jnp.float32) + bias_ref[...]
        return _ln(y, g2_ref[...], b2_ref[...])
    # torch cats penultimate/ultimate along the seq axis; do it in-register here
    o_ref[0] = jnp.concatenate([proc(xp_ref), proc(xu_ref)], axis=0).astype(o_ref.dtype)


# ----------------------------------------------------------------------------- wrappers
def pallas_patch_embed(x2d, w, *, tile_rows=512):
    M, K = x2d.shape
    N = w.shape[1]
    tm = M if M <= tile_rows else tile_rows
    return pl.pallas_call(
        patch_embed_kernel,
        out_shape=jax.ShapeDtypeStruct((M, N), jnp.bfloat16),
        grid=(pl.cdiv(M, tm),),
        in_specs=[
            pl.BlockSpec((tm, K), lambda i: (i, 0)),
            _const_spec((K, N)),
        ],
        out_specs=pl.BlockSpec((tm, N), lambda i: (i, 0)),
        compiler_params=pltpu.CompilerParams(
            dimension_semantics=("parallel",), vmem_limit_bytes=VMEM_LIMIT),
    )(x2d, w)


def pallas_layernorm(x2d, g, b, *, tile_rows=512):
    M, D = x2d.shape
    tm = M if M <= tile_rows else tile_rows
    return pl.pallas_call(
        layernorm_kernel,
        out_shape=jax.ShapeDtypeStruct((M, D), jnp.bfloat16),
        grid=(pl.cdiv(M, tm),),
        in_specs=[
            pl.BlockSpec((tm, D), lambda i: (i, 0)),
            _const_spec((1, D)),
            _const_spec((1, D)),
        ],
        out_specs=pl.BlockSpec((tm, D), lambda i: (i, 0)),
        compiler_params=pltpu.CompilerParams(
            dimension_semantics=("parallel",), vmem_limit_bytes=VMEM_LIMIT),
    )(x2d, g, b)


def pallas_resblock(x, p):
    B, L, D = x.shape
    F = p["wfc"].shape[1]
    kern = functools.partial(resblock_kernel, scale=1.0 / (D ** 0.5), d=D)
    return pl.pallas_call(
        kern,
        out_shape=jax.ShapeDtypeStruct((B, L, D), jnp.bfloat16),
        grid=(B,),
        in_specs=[
            pl.BlockSpec((1, L, D), lambda i: (i, 0, 0)),       # x
            _const_spec((1, D)), _const_spec((1, D)),           # ln1 gamma/beta
            _const_spec((D, 3 * D)), _const_spec((1, 3 * D)),   # fused qkv
            _const_spec((D, D)), _const_spec((1, D)),           # out proj
            _const_spec((1, D)), _const_spec((1, D)),           # ln2 gamma/beta
            _const_spec((D, F)), _const_spec((1, F)),           # mlp fc
            _const_spec((F, D)), _const_spec((1, D)),           # mlp proj
        ],
        out_specs=pl.BlockSpec((1, L, D), lambda i: (i, 0, 0)),
        compiler_params=pltpu.CompilerParams(
            dimension_semantics=("parallel",), vmem_limit_bytes=VMEM_LIMIT),
    )(x, p["ln1_g"], p["ln1_b"], p["wqkv"], p["bqkv"], p["wo"], p["bo"],
      p["ln2_g"], p["ln2_b"], p["wfc"], p["bfc"], p["wpr"], p["bpr"])


def pallas_head(x_pen, x_ult, g1, b1, w, bias, g2, b2):
    B, L, Din = x_pen.shape
    Dout = w.shape[1]
    return pl.pallas_call(
        head_kernel,
        out_shape=jax.ShapeDtypeStruct((B, 2 * L, Dout), jnp.float32),
        grid=(B,),
        in_specs=[
            pl.BlockSpec((1, L, Din), lambda i: (i, 0, 0)),     # x_penultimate
            pl.BlockSpec((1, L, Din), lambda i: (i, 0, 0)),     # x_ultimate
            _const_spec((1, Din)), _const_spec((1, Din)),       # ln_pre_out
            _const_spec((Din, Dout)), _const_spec((1, Dout)),   # linear_out
            _const_spec((1, Dout)), _const_spec((1, Dout)),     # ln_post_out
        ],
        out_specs=pl.BlockSpec((1, 2 * L, Dout), lambda i: (i, 0, 0)),
        compiler_params=pltpu.CompilerParams(
            dimension_semantics=("parallel",), vmem_limit_bytes=VMEM_LIMIT),
    )(x_pen, x_ult, g1, b1, w, bias, g2, b2)


# ----------------------------------------------------------------------------- model
def cap_forward_visual(pixel_values, params, *, patch):
    """Mirrors CapWrapper.forward_visual (batch-first layout)."""
    B, C, H, W = pixel_values.shape
    P = patch
    Hp, Wp = H // P, W // P
    Np = Hp * Wp
    width = params["conv_w"].shape[1]

    # conv1 (kernel=stride=P, bias=False) == patchify + bf16 matmul (matmul in Pallas)
    xp = pixel_values.reshape(B, C, Hp, P, Wp, P).transpose(0, 2, 4, 1, 3, 5)
    patches = xp.reshape(B * Np, C * P * P).astype(jnp.bfloat16)
    tok = pallas_patch_embed(patches, params["conv_w"])
    x = tok.reshape(B, Np, width).astype(jnp.float32)

    # class token + positional embedding (glue); patch_dropout is identity at eval
    cls = jnp.broadcast_to(params["class_emb"], (B, 1, width))
    x = jnp.concatenate([cls, x], axis=1) + params["pos_emb"]
    L = Np + 1

    # ln_pre (row-tiled over B*L)
    x = pallas_layernorm(x.reshape(B * L, width),
                         params["ln_pre_g"], params["ln_pre_b"]).reshape(B, L, width)

    # transformer.resblocks[:-1] -> penultimate, last block -> ultimate
    for p in params["blocks"][:-1]:
        x = pallas_resblock(x, p)
    x_pen = x
    x_ult = pallas_resblock(x_pen, params["blocks"][-1])

    # torch cats [x_pen, x_ult] along the seq axis, then ln_pre_out -> linear_out ->
    # ln_post_out; the concat is fused into the head kernel (no HBM round trip).
    # The final permute(1, 0, 2) only restores batch-first; we are already batch-first.
    return pallas_head(x_pen, x_ult,
                       params["head_ln1_g"], params["head_ln1_b"],
                       params["lin_w"], params["lin_b"],
                       params["head_ln2_g"], params["head_ln2_b"])


def cap_wrapper_forward(pixel_values, captions, attention_mask, params, *, patch):
    enc = cap_forward_visual(pixel_values, params, patch=patch)
    # TODO(synk): self.decoder (GPT2LMHeadModel with cross-attention) is an external
    # pretrained LM with no clean in-scope Pallas equivalent; return visual features.
    del captions, attention_mask
    return enc


def init_params(key, *, C, P, width, n_embd, n_layers, mlp, num_patches):
    keys = iter(jax.random.split(key, 8 + 6 * n_layers))

    def nrm(shape, s=0.02):
        return (s * jax.random.normal(next(keys), shape)).astype(jnp.float32)

    bf16 = lambda a: a.astype(jnp.bfloat16)
    ones = lambda s: jnp.ones(s, jnp.float32)
    zeros = lambda s: jnp.zeros(s, jnp.float32)

    blocks = []
    for _ in range(n_layers):
        wq, wk, wv = nrm((width, width)), nrm((width, width)), nrm((width, width))
        blocks.append(dict(
            ln1_g=ones((1, width)), ln1_b=zeros((1, width)),
            wqkv=bf16(jnp.concatenate([wq, wk, wv], axis=1)),   # fused [D, 3D]
            bqkv=zeros((1, 3 * width)),
            wo=bf16(nrm((width, width))), bo=zeros((1, width)),
            ln2_g=ones((1, width)), ln2_b=zeros((1, width)),
            wfc=bf16(nrm((width, mlp))), bfc=zeros((1, mlp)),
            wpr=bf16(nrm((mlp, width))), bpr=zeros((1, width)),
        ))

    return dict(
        conv_w=bf16(nrm((C * P * P, width))),             # conv1 weight, flattened (bias=False)
        class_emb=nrm((1, 1, width)),
        pos_emb=nrm((1, num_patches + 1, width)),
        ln_pre_g=ones((1, width)), ln_pre_b=zeros((1, width)),
        head_ln1_g=ones((1, width)), head_ln1_b=zeros((1, width)),    # ln_pre_out
        lin_w=bf16(nrm((width, n_embd))), lin_b=zeros((1, n_embd)),   # linear_out
        head_ln2_g=ones((1, n_embd)), head_ln2_b=zeros((1, n_embd)),  # ln_post_out
        blocks=blocks,
    )


if __name__ == "__main__":
    B, C, H, W = 2, 3, 16, 16
    P = 4                 # patch size -> Np = 16 patches
    WIDTH = 32            # in_dim  (visual_backbone.conv1 out channels)
    N_EMBD = 32           # out_dim (args.n_embd)
    N_VIS_LAYERS = 2      # resblocks: [:-1] -> penultimate, [-1] -> ultimate
    MLP = 4 * WIDTH

    key = jax.random.PRNGKey(0)
    k_x, k_p, k_c = jax.random.split(key, 3)
    pixel_values = jax.random.normal(k_x, (B, C, H, W), jnp.float32)
    captions = jax.random.randint(k_c, (B, 8), 0, 100, jnp.int32)
    attention_mask = jnp.ones((B, 8), jnp.int32)

    Np = (H // P) * (W // P)
    params = init_params(k_p, C=C, P=P, width=WIDTH, n_embd=N_EMBD,
                         n_layers=N_VIS_LAYERS, mlp=MLP, num_patches=Np)

    out = cap_wrapper_forward(pixel_values, captions, attention_mask, params, patch=P)
    out = jax.block_until_ready(out)
    assert out.shape == (B, 2 * (Np + 1), N_EMBD)
    assert bool(jnp.all(jnp.isfinite(out)))
    print("KERNEL_OK")
</pallas_src>

<mosaic_0001>
module attributes {stable_mosaic.version = 11 : i64} {
  func.func @patch_embed_kernel(%arg0: i32, %arg1: memref<32x48xbf16, #tpu.memory_space<vmem>>, %arg2: memref<48x32xbf16, #tpu.memory_space<vmem>>, %arg3: memref<32x32xbf16, #tpu.memory_space<vmem>>) attributes {dimension_semantics = [#tpu.dimension_semantics<parallel>], iteration_bounds = array<i64: 1>, scalar_prefetch = 0 : i64, scratch_operands = 0 : i64, tpu.core_type = #tpu.core_type<tc>, window_params = [{transform_indices = @transform_0, window_bounds = array<i64: 32, 48>}, {pipeline_mode = #tpu.pipeline_mode<synchronous>, transform_indices = @transform_1, window_bounds = array<i64: 48, 32>}, {transform_indices = @transform_2, window_bounds = array<i64: 32, 32>}]} {
    %c0 = arith.constant 0 : index
    %c0_0 = arith.constant 0 : index
    %0 = vector.load %arg1[%c0, %c0_0] : memref<32x48xbf16, #tpu.memory_space<vmem>>, vector<32x48xbf16>
    %c0_1 = arith.constant 0 : index
    %c0_2 = arith.constant 0 : index
    %1 = vector.load %arg2[%c0_1, %c0_2] : memref<48x32xbf16, #tpu.memory_space<vmem>>, vector<48x32xbf16>
    %cst = arith.constant dense<0.000000e+00> : vector<32x32xf32>
    %2 = tpu.matmul %0, %1, %cst {dimension_numbers = #tpu.dot_dimension_numbers<[1], [0], [0], [1], [0, 0, 1, 1], [], []>} : vector<32x48xbf16>, vector<48x32xbf16>, vector<32x32xf32> -> vector<32x32xf32>
    %3 = arith.truncf %2 : vector<32x32xf32> to vector<32x32xbf16>
    %c0_3 = arith.constant 0 : index
    %c0_4 = arith.constant 0 : index
    %4 = vector.load %arg3[%c0_3, %c0_4] : memref<32x32xbf16, #tpu.memory_space<vmem>>, vector<32x32xbf16>
    tpu.vector_store %arg3[%c0_3, %c0_4], %3 {strides = array<i32>} : memref<32x32xbf16, #tpu.memory_space<vmem>>, vector<32x32xbf16>,
    return
  }
  func.func @transform_0(%arg0: i32) -> (i32, i32) {
    %c0_i32 = arith.constant 0 : i32
    %c0_i32_0 = arith.constant 0 : i32
    return %arg0, %c0_i32 : i32, i32
  }
  func.func @transform_1(%arg0: i32) -> (i32, i32) {
    %c0_i32 = arith.constant 0 : i32
    %c0_i32_0 = arith.constant 0 : i32
    %c0_i32_1 = arith.constant 0 : i32
    return %c0_i32, %c0_i32_0 : i32, i32
  }
  func.func @transform_2(%arg0: i32) -> (i32, i32) {
    %c0_i32 = arith.constant 0 : i32
    %c0_i32_0 = arith.constant 0 : i32
    return %arg0, %c0_i32 : i32, i32
  }
}

</mosaic_0001>

<bundles_post_ra>
// kernel: tpu_custom_call.1
= control target key start
LH: loop header
LB: loop body
LE: loop exit
PB: predicated region body
PF: predicated region fallthrough
CT: control target
= control target key end

     0   :  { %vm51_vm0 = vcmask 392192   ;;  %s251_s0 = inlined_call_operand.vmem [shape: bf16[32,48], index: 0, kind: input, shape index: {}]   ;;  %s252_s1 = inlined_call_operand.vmem [shape: bf16[48,32], index: 1, kind: input, shape index: {}]   ;;  %s253_s2 = inlined_call_operand.hbm [shape: bf16[32,32], index: 2, kind: output, shape index: {}]  }
   0x1   :  { %v177_v0 = vld [vmem:[%s252_s1] sm:$0xff]   ;;  %v178_v1 = vld [vmem:[%s252_s1 + $0x8] sm:$0xff]   ;;  %v179_v3 = vld [vmem:[%s252_s1 + $0x10] sm:$0xff]  }
   0x2   :  { %164 = vmatprep.subr.bf16.mxu0 %v177_v0  ;;  %v180_v2 = vld [vmem:[%s251_s0] sm:$0xff]  }
   0x3   :  { %165 = vmatpush3.bf16.msra.mxu0 %v177_v0  ;;  %170 = vmatprep.mubr.msk.bf16.mxu0 %vm51_vm0, %v180_v2 }
   0x4   :  { %166 = vmatprep.subr.bf16.mxu0 %v178_v1 }
   0x5   :  { %7 = vsyncpa [#allocation3], 0  ;;  %v181_v4 = vld [vmem:[%s251_s0 + $0x8] sm:$0xff]   ;;  %vm123_vm1 = vcmask 257024   ;;  %s206_s19 = smov [#allocation2]  }
   0x6   :  { %s133_s20 = sshll.u32 %s206_s19, 4  ;;  %s134_s20 = int_to_ptr.vmem [resolvable:$true] %s133_s20 }
   0x7   :  { %167 = vmatpush3.bf16.msra.mxu0 %v178_v1  ;;  %s182_s1 = scalar_lea.vmem %s134_s20, 256  ;;  %p187_p1 = scmp.lt.s32.totalorder %s134_s20, %s134_s20 }
   0x8   :  { %168 = vmatprep.subr.bf16.mxu0 %v179_v3  ;;  %p183_p0 = scmp.ne.s32.totalorder %s134_s20, %s182_s1  ;;  %p188_p2 = scmp.lt.s32.totalorder %s182_s1, %s182_s1 }
   0xa   :  { %p189_p3 = por %p188_p2, %p187_p1 }
   0xb   :  { %169 = vmatpush3.bf16.msra.mxu0 %v179_v3 }
   0xc   :  { %p190_p4 = pnand %p189_p3, %p183_p0 }
   0xe   :  { %171 = vmatmul.mubr.msk.bf16.vlgmr.msra.gmra.mrb[0].mxu0 %vm51_vm0, %v181_v4 }
  0xe1   :  { %v172_v5 = vpop.f32.mrb[0].mxu0 }
  0xe2   :  { %v157_v6 = vpack.c.bf16 %v172_v5, %v172_v5  ;;  %v92_v7 = vpop.f32.mrb[1].mxu0 }
  0xe3   :  { %v155_v8 = vpack.c.bf16 %v92_v7, %v92_v7  ;;  %v173_v9 = vpop.f32.mrb[2].mxu0 }
  0xe4   :  { %126 = vst.msk [vmem:[#allocation2 + $0x8] sm:$0xf] %vm123_vm1, %v157_v6  ;;  %v158_v10 = vpack.c.bf16 %v173_v9, %v173_v9  ;;  %v95_v11 = vpop.f32.mrb[3].mxu0 }
  0xe5   :  { %124 = vst.msk [vmem:[#allocation2] sm:$0xf] %vm123_vm1, %v155_v8  ;;  %v156_v12 = vpack.c.bf16 %v95_v11, %v95_v11 }
  0xe6   :  { %127 = vst.msk [vmem:[#allocation2 + $0xc] sm:$0xf] %vm123_vm1, %v158_v10 }
  0xe7   :  { %125 = vst.msk [vmem:[#allocation2 + $0x4] sm:$0xf] %vm123_vm1, %v156_v12 }
  0xe8   :  { %193 = shalt.err (!%p190_p4)
}
  0xe9   :  { %s194_s22 = scalar_lea.hbm %s253_s2, 256 }
  0xea   :  { %p195_p5 = scmp.ne.s32.totalorder %s253_s2, %s194_s22  ;;  %p198_p6 = scmp.lt.u32.totalorder %s194_s22, %s253_s2 }
  0xec   :  { %p200_p7 = pnand %p198_p6, %p195_p5 }
  0xee   :  { %203 = shalt.err (!%p200_p7)
}
  0xef   :  { %s207_s27 = smov 64   ;;  %s208_s28 = smov 4  }
  0xf0   :  { %139 = dma.vmem_to_hbm [thread:$0]  %s134_s20, 256, %s253_s2, [#allocation3], %s207_s27, %s207_s27, %s208_s28  }
  0xf1   :  { %204 = dma.done.wait [#allocation3], 256  }
  0xf2   :  { %205 = vsyncadd [#allocation3], 4294967040 }
  0xf3   :  { %143 = vsyncpa [#allocation3], 1 }

</bundles_post_ra>
